<compile_context>
chip_gen: v7x
topology: tpu7x:2x2x1
jax: 0.10.0
libtpu: 0.0.40
codegen_flags: <defaults>
</compile_context>

<pallas_src>
from functools import partial

import numpy as np
import jax
import jax.numpy as jnp
from jax.experimental import pallas as pl
from jax.experimental.pallas import tpu as pltpu

_EPS = 1e-12


# ----------------------------------------------------------------------------
# Stage 1: support prototypes  (N, C, D) -> (C, D) bf16
# ----------------------------------------------------------------------------
def _prototype_kernel(s_ref, proto_ref, acc_ref):
    # grid = (C_tiles, N); N is the reduction axis (last, "arbitrary")
    ni = pl.program_id(1)

    @pl.when(ni == 0)
    def _():
        acc_ref[...] = jnp.zeros_like(acc_ref)

    s = s_ref[...].astype(jnp.float32)                             # (TILE_C, D)
    inv = jax.lax.rsqrt(jnp.sum(s * s, axis=-1, keepdims=True) + _EPS)  # EUP
    acc_ref[...] += s * inv                                        # sum of unit vecs

    @pl.when(ni == pl.num_programs(1) - 1)
    def _():
        acc = acc_ref[...]
        # mean over N then renorm == sum over N then renorm
        inv2 = jax.lax.rsqrt(jnp.sum(acc * acc, axis=-1, keepdims=True) + _EPS)
        proto_ref[...] = (acc * inv2).astype(proto_ref.dtype)      # bf16 store


# ----------------------------------------------------------------------------
# Stage 2: classify  (Q, D) x (C, D) -> (Q, C) probabilities
# ----------------------------------------------------------------------------
def _classify_kernel(q_ref, p_ref, *rest, scale, bias, out_norm, use_mask):
    if use_mask:
        mask_ref, o_ref = rest
    else:
        (o_ref,) = rest

    # normalize query tile in f32 (eps so all-zero padded rows stay finite)
    q = q_ref[...].astype(jnp.float32)                             # (TILE_Q, D)
    q = q * jax.lax.rsqrt(jnp.sum(q * q, axis=-1, keepdims=True) + _EPS)

    # feed the MXU bf16, accumulate f32; contract last dim of both operands
    # (no (D, C) transpose materialized).
    sim = jax.lax.dot_general(
        q.astype(jnp.bfloat16), p_ref[...],
        (((1,), (1,)), ((), ())),
        preferred_element_type=jnp.float32)                        # (TILE_Q, C)

    # scale / bias / tau are compile-time constants (folded FMA)
    sim = scale * sim + bias

    if use_mask:
        sim = jnp.where(mask_ref[...] == 0, -jnp.inf, sim)

    if out_norm == "softmax":
        m = jnp.max(sim, axis=-1, keepdims=True)
        e = jnp.exp(sim - m)
        denom = jnp.sum(e, axis=-1, keepdims=True)
        out = e * pl.reciprocal(denom, approx=True)                # EUP slot
    else:  # sigmoid
        out = jax.nn.sigmoid(sim)

    o_ref[...] = out.astype(o_ref.dtype)


# ----------------------------------------------------------------------------
# Wrapper
# ----------------------------------------------------------------------------
def _round_up(x, m):
    return ((x + m - 1) // m) * m


def _pick_tile_c(total, preferred=(512, 256, 128)):
    for t in preferred:
        if t < total and total % t == 0:
            return t
    return total


def _preferred_query_tile():
    # 256x256 MXU (v6e / v7x) -> 256-row query tiles; 128x128 MXUs -> 128.
    try:
        kind = jax.devices()[0].device_kind.lower()
    except Exception:
        kind = ""
    if any(g in kind for g in ("v2", "v3", "v4", "v5")):
        return 128
    return 256


def _clamp_vmem(need_bytes):
    return int(min(max(need_bytes + (4 << 20), 32 << 20), 100 << 20))


def nearest_neighbours_classifier(query, supports, mask=None, *,
                                  tau=1.0, out_norm="softmax",
                                  logit_scale=float(np.log(1.0 / 0.07)),
                                  logit_bias=0.0):
    """JAX/Pallas equivalent of NearestNeighboursClassifier.forward."""
    assert out_norm in ("softmax", "sigmoid")
    query = jnp.asarray(query)
    supports = jnp.asarray(supports)
    if supports.ndim == 2:
        supports = supports[None]                   # (1, C, D)

    Q, D = query.shape
    N, C, D2 = supports.shape
    assert D == D2
    use_mask = mask is not None

    # ---- query tiling (only the cheap (Q, D) tensor is ever padded) --------
    tile_q_max = _preferred_query_tile()
    if Q <= tile_q_max:
        Q_pad = _round_up(Q, 8)
        tile_q = Q_pad
    else:
        tile_q = tile_q_max
        Q_pad = _round_up(Q, tile_q)

    q_p = query if Q_pad == Q else jnp.pad(query, ((0, Q_pad - Q), (0, 0)))
    if use_mask:
        mask = jnp.asarray(mask)
        assert mask.shape == (Q, C)
        m_i8 = (mask != 0).astype(jnp.int8)         # 4x smaller mask DMA
        if Q_pad != Q:
            m_i8 = jnp.pad(m_i8, ((0, Q_pad - Q), (0, 0)), constant_values=1)

    # ---- stage 1: prototypes (supports NOT padded / copied) -----------------
    tile_c = _pick_tile_c(C)
    s_item = supports.dtype.itemsize
    vmem1 = _clamp_vmem(2 * tile_c * D * s_item      # double-buffered in tile
                        + 2 * tile_c * D * 2         # double-buffered out tile
                        + tile_c * D * 4             # f32 accumulator
                        + 4 * tile_c * D * 4)        # intermediates headroom

    proto = pl.pallas_call(
        _prototype_kernel,
        out_shape=jax.ShapeDtypeStruct((C, D), jnp.bfloat16),
        grid=(C // tile_c, N),
        in_specs=[pl.BlockSpec((None, tile_c, D), lambda ci, ni: (ni, ci, 0))],
        out_specs=pl.BlockSpec((tile_c, D), lambda ci, ni: (ci, 0)),
        scratch_shapes=[pltpu.VMEM((tile_c, D), jnp.float32)],
        compiler_params=pltpu.CompilerParams(
            dimension_semantics=("parallel", "arbitrary"),
            vmem_limit_bytes=vmem1),
    )(supports)

    # ---- stage 2: classify ---------------------------------------------------
    # Fold exp(logit_scale), tau, bias into two compile-time scalars.
    scale = float(np.exp(logit_scale)) / float(tau)
    bias = float(logit_bias) / float(tau)

    kernel = partial(_classify_kernel, scale=scale, bias=bias,
                     out_norm=out_norm, use_mask=use_mask)

    in_specs = [
        pl.BlockSpec((tile_q, D), lambda i: (i, 0)),               # query tile
        pl.BlockSpec(memory_space=pltpu.MemorySpace.VMEM),         # resident bf16 prototype
    ]
    args = [q_p, proto]
    if use_mask:
        in_specs.append(pl.BlockSpec((tile_q, C), lambda i: (i, 0)))
        args.append(m_i8)

    flops = (2 * Q_pad * C * D       # matmul
             + 4 * Q_pad * D         # query normalization
             + 6 * Q_pad * C)        # scale/bias/softmax
    transcendentals = Q_pad * C + Q_pad
    bytes_accessed = (q_p.size * q_p.dtype.itemsize
                      + proto.size * 2
                      + (Q_pad * C * 1 if use_mask else 0)
                      + Q_pad * C * 4)

    vmem2 = _clamp_vmem(2 * C * D * 2                 # prototype (+slack)
                        + 2 * tile_q * D * q_p.dtype.itemsize
                        + (2 * tile_q * C if use_mask else 0)
                        + 2 * tile_q * C * 4
                        + 8 * tile_q * max(C, D) * 4)  # f32 intermediates

    out = pl.pallas_call(
        kernel,
        out_shape=jax.ShapeDtypeStruct((Q_pad, C), jnp.float32),
        grid=(Q_pad // tile_q,),
        in_specs=in_specs,
        out_specs=pl.BlockSpec((tile_q, C), lambda i: (i, 0)),
        compiler_params=pltpu.CompilerParams(
            dimension_semantics=("parallel",),       # megacore over Q
            vmem_limit_bytes=vmem2),
        cost_estimate=pl.CostEstimate(flops=int(flops),
                                      transcendentals=int(transcendentals),
                                      bytes_accessed=int(bytes_accessed)),
    )(*args)

    return out[:Q, :]


# ----------------------------------------------------------------------------
# Pure-JAX reference (mirrors the torch module)
# ----------------------------------------------------------------------------
def _reference(query, supports, mask=None, *, tau=1.0, out_norm="softmax",
               logit_scale=float(np.log(1.0 / 0.07)), logit_bias=0.0):
    q = query / jnp.linalg.norm(query, axis=-1, keepdims=True)
    s = supports if supports.ndim == 3 else supports[None]
    s = s / jnp.linalg.norm(s, axis=-1, keepdims=True)
    s = s.mean(axis=0)
    s = s / jnp.linalg.norm(s, axis=-1, keepdims=True)
    sim = np.exp(logit_scale) * (q @ s.T) + logit_bias
    if tau != 1.0:
        sim = sim / tau
    if mask is not None:
        sim = jnp.where(mask == 0, -jnp.inf, sim)
    return jax.nn.softmax(sim, axis=-1) if out_norm == "softmax" else jax.nn.sigmoid(sim)


if __name__ == "__main__":
    key = jax.random.PRNGKey(0)
    kq, ks, km = jax.random.split(key, 3)

    Q, N, C, D = 8, 2, 16, 32            # small synthetic shapes
    query = jax.random.normal(kq, (Q, D), jnp.float32)
    supports = jax.random.normal(ks, (N, C, D), jnp.float32)
    mask = (jax.random.uniform(km, (Q, C)) > 0.2).astype(jnp.float32)
    mask = mask.at[:, 0].set(1.0)        # avoid fully-masked rows (NaN softmax)

    # softmax + mask path
    out = nearest_neighbours_classifier(query, supports, mask,
                                        tau=1.0, out_norm="softmax")
    out = jax.block_until_ready(out)
    ref = _reference(query, supports, mask, tau=1.0, out_norm="softmax")
    # tolerances loosened for the bf16 MXU feed / bf16 prototype
    np.testing.assert_allclose(np.asarray(out), np.asarray(ref),
                               rtol=5e-2, atol=5e-3)

    # sigmoid, no mask, tau != 1 path (mask buffer not allocated at all)
    out2 = nearest_neighbours_classifier(query, supports, None,
                                         tau=2.0, out_norm="sigmoid")
    out2 = jax.block_until_ready(out2)
    ref2 = _reference(query, supports, None, tau=2.0, out_norm="sigmoid")
    np.testing.assert_allclose(np.asarray(out2), np.asarray(ref2),
                               rtol=5e-2, atol=5e-3)

    print("KERNEL_OK")
</pallas_src>

<mosaic_0001>
module attributes {stable_mosaic.version = 11 : i64} {
  func.func @_prototype_kernel(%arg0: i32, %arg1: i32, %arg2: memref<1x16x32xf32, #tpu.memory_space<vmem>>, %arg3: memref<16x32xbf16, #tpu.memory_space<vmem>>, %arg4: memref<16x32xf32, #tpu.memory_space<vmem>>) attributes {dimension_semantics = [#tpu.dimension_semantics<parallel>, #tpu.dimension_semantics<arbitrary>], iteration_bounds = array<i64: 1, 2>, scalar_prefetch = 0 : i64, scratch_operands = 1 : i64, tpu.core_type = #tpu.core_type<tc>, window_params = [{transform_indices = @transform_0, window_bounds = array<i64: 1, 16, 32>}, {transform_indices = @transform_1, window_bounds = array<i64: 16, 32>}]} {
    %c0_i32 = arith.constant 0 : i32
    %0 = arith.cmpi eq, %arg1, %c0_i32 : i32
    %1 = arith.extui %0 : i1 to i32
    %c0_i32_0 = arith.constant 0 : i32
    %2 = arith.cmpi ne, %1, %c0_i32_0 : i32
    scf.if %2 {
      %cst_9 = arith.constant 0.000000e+00 : f32
      %19 = vector.broadcast %cst_9 : f32 to vector<16x32xf32>
      %c0_10 = arith.constant 0 : index
      %c0_11 = arith.constant 0 : index
      %20 = vector.load %arg4[%c0_10, %c0_11] : memref<16x32xf32, #tpu.memory_space<vmem>>, vector<16x32xf32>
      tpu.vector_store %arg4[%c0_10, %c0_11], %19 {strides = array<i32>} : memref<16x32xf32, #tpu.memory_space<vmem>>, vector<16x32xf32>,
    } else {
    }
    %c0 = arith.constant 0 : index
    %c0_1 = arith.constant 0 : index
    %c0_2 = arith.constant 0 : index
    %3 = vector.load %arg2[%c0, %c0_1, %c0_2] : memref<1x16x32xf32, #tpu.memory_space<vmem>>, vector<1x16x32xf32>
    %4 = vector.shape_cast %3 : vector<1x16x32xf32> to vector<16x32xf32>
    %5 = arith.mulf %4, %4 : vector<16x32xf32>
    %cst = arith.constant dense<0.000000e+00> : vector<16xf32>
    %6 = vector.multi_reduction <add>, %5, %cst [1] : vector<16x32xf32> to vector<16xf32>
    %7 = vector.shape_cast %6 : vector<16xf32> to vector<16x1xf32>
    %cst_3 = arith.constant 9.99999996E-13 : f32
    %8 = vector.broadcast %cst_3 : f32 to vector<16x1xf32>
    %9 = arith.addf %7, %8 : vector<16x1xf32>
    %10 = math.rsqrt %9 : vector<16x1xf32>
    %c0_4 = arith.constant 0 : index
    %c0_5 = arith.constant 0 : index
    %11 = vector.load %arg4[%c0_4, %c0_5] : memref<16x32xf32, #tpu.memory_space<vmem>>, vector<16x32xf32>
    %12 = vector.broadcast %10 : vector<16x1xf32> to vector<16x32xf32>
    %13 = arith.mulf %4, %12 : vector<16x32xf32>
    %14 = arith.addf %11, %13 : vector<16x32xf32>
    %c0_6 = arith.constant 0 : index
    %c0_7 = arith.constant 0 : index
    %15 = vector.load %arg4[%c0_6, %c0_7] : memref<16x32xf32, #tpu.memory_space<vmem>>, vector<16x32xf32>
    tpu.vector_store %arg4[%c0_6, %c0_7], %14 {strides = array<i32>} : memref<16x32xf32, #tpu.memory_space<vmem>>, vector<16x32xf32>,
    %c1_i32 = arith.constant 1 : i32
    %16 = arith.cmpi eq, %arg1, %c1_i32 : i32
    %17 = arith.extui %16 : i1 to i32
    %c0_i32_8 = arith.constant 0 : i32
    %18 = arith.cmpi ne, %17, %c0_i32_8 : i32
    scf.if %18 {
      %c0_9 = arith.constant 0 : index
      %c0_10 = arith.constant 0 : index
      %19 = vector.load %arg4[%c0_9, %c0_10] : memref<16x32xf32, #tpu.memory_space<vmem>>, vector<16x32xf32>
      %20 = arith.mulf %19, %19 : vector<16x32xf32>
      %cst_11 = arith.constant dense<0.000000e+00> : vector<16xf32>
      %21 = vector.multi_reduction <add>, %20, %cst_11 [1] : vector<16x32xf32> to vector<16xf32>
      %22 = vector.shape_cast %21 : vector<16xf32> to vector<16x1xf32>
      %cst_12 = arith.constant 9.99999996E-13 : f32
      %23 = vector.broadcast %cst_12 : f32 to vector<16x1xf32>
      %24 = arith.addf %22, %23 : vector<16x1xf32>
      %25 = math.rsqrt %24 : vector<16x1xf32>
      %26 = vector.broadcast %25 : vector<16x1xf32> to vector<16x32xf32>
      %27 = arith.mulf %19, %26 : vector<16x32xf32>
      %28 = arith.truncf %27 : vector<16x32xf32> to vector<16x32xbf16>
      %c0_13 = arith.constant 0 : index
      %c0_14 = arith.constant 0 : index
      %29 = vector.load %arg3[%c0_13, %c0_14] : memref<16x32xbf16, #tpu.memory_space<vmem>>, vector<16x32xbf16>
      tpu.vector_store %arg3[%c0_13, %c0_14], %28 {strides = array<i32>} : memref<16x32xbf16, #tpu.memory_space<vmem>>, vector<16x32xbf16>,
    } else {
    }
    return
  }
  func.func @transform_0(%arg0: i32, %arg1: i32) -> (i32, i32, i32) {
    %c0_i32 = arith.constant 0 : i32
    %c0_i32_0 = arith.constant 0 : i32
    return %arg1, %arg0, %c0_i32 : i32, i32, i32
  }
  func.func @transform_1(%arg0: i32, %arg1: i32) -> (i32, i32) {
    %c0_i32 = arith.constant 0 : i32
    %c0_i32_0 = arith.constant 0 : i32
    return %arg0, %c0_i32 : i32, i32
  }
}

</mosaic_0001>

<bundles_post_ra>
// kernel: tpu_custom_call.1
= control target key start
LH: loop header
LB: loop body
LE: loop exit
PB: predicated region body
PF: predicated region fallthrough
CT: control target
= control target key end

     0   :  { %6 = vsyncpa [#allocation4], 0  ;;  %s663_s0 = inlined_call_operand.hbm [shape: f32[2,16,32], index: 0, kind: input, shape index: {}]   ;;  %s664_s1 = inlined_call_operand.hbm [shape: bf16[16,32], index: 1, kind: output, shape index: {}]  }
   0x1   :  { %8 = vsyncpa [#allocation4 + $0x1], 0 }
   0x2   :  { %9 = vsyncpa [#allocation5], 0  ;;  %s506_s6 = smov 0   ;;  %s508_s7 = smov 0  }
   0x3   :  { %s510_s8 = smov 0   ;;  %s512_s9 = smov 0  }
   0x4   :  { %s514_s10 = smov 0   ;;  %s516_s11 = smov 0  }
   0x5 LB: > { %s283_s12 = sadd.s32 4294967295, %s487_s11   ;;  %s24_s13 = sadd.s32 1, %s483_s10  ;;  %s487_s11 = sphi %s516_s11, %s15_s11   ;;  %s483_s10 = sphi %s514_s10, %s673_s10   ;;  %s479_s9 = sphi %s512_s9, %s672_s9   ;;  %s475_s8 = sphi %s510_s8, %s671_s8   ;;  %s471_s7 = sphi %s508_s7, %s670_s7   ;;  %s467_s6 = sphi %s506_s6, %s669_s6  }
   0x6   : > { %p25_p0 = scmp.ge.s32.totalorder %s24_s13, 2  ;;  %s36_s14 = sadd.s32 1, %s475_s8 }
   0x7   : > { %p43_p1 = scmp.ne.s32.totalorder %s475_s8, %s471_s7  ;;  %p44_p2 = scmp.eq.s32.totalorder %s487_s11, 0 }
   0x8   : > { %s675_s13 = smov (%p25_p0, %s24_s13), 0  ;;  %p49_p4 = scmp.ne.s32.totalorder %s471_s7, %s467_s6 }
   0x9   : > { %p542_p3 = por %p44_p2, %p43_p1  ;;  %s31_s16 = ssub.s32 %s483_s10, %s675_s13 }
   0xa   : > { %p50_p5 = scmp.eq.s32.totalorder %s283_s12, 0  ;;  %p34_p6 = scmp.eq.s32.totalorder %s31_s16, 0 }
   0xb   : > { %p312_p8 = scmp.lt.s32.totalorder %s487_s11, 2  ;;  %s99_s19 = sand.u32 1, %s475_s8  }
   0xc   : > { %p551_p7 = por %p50_p5, %p49_p4  ;;  %s299_s20 = sshll.u32 %s483_s10, 8 }
   0xd   : > { %s557_s18 = scalar_select %p34_p6, %s475_s8, %s36_s14  }
   0xe   : > { %s286_s21 = sshll.u32 %s99_s19, 4  ;;  %s564_s24 = scalar_lea.hbm %s663_s0, %s299_s20 }
   0xf   : > { %s103_s25 = scalar_lea.vmem [#allocation3], %s286_s21  ;;  %p568_p9 = pnand %p312_p8, %p542_p3 }
  0x10   : > { %s112_s26 = sshll.u32 %s103_s25, 4  ;;  %s574_s28 = scalar_lea.sflag [#allocation4], %s99_s19  ;;  %s572_s26 = int_to_ptr.vmem [resolvable:$true] %s112_s26 }
  0x11   : > { %s377_s29 = scalar_lea.hbm %s564_s24, 256  ;;  %p379_p11 = pneg %p568_p9 }
  0x12   : > { %p378_p10 = scmp.ne.s32.totalorder %s564_s24, %s377_s29  ;;  %s382_s3 = scalar_lea.hbm %s663_s0, 512 }
  0x13   : > { %p383_p0 = scmp.lt.u32.totalorder %s564_s24, %s663_s0  ;;  %p384_p1 = scmp.lt.u32.totalorder %s382_s3, %s377_s29 }
  0x14   : > { %p380_p12 = pnand %p379_p11, %p378_p10  ;;  %p386_p3 = scmp.lt.u32.totalorder %s377_s29, %s564_s24 }
  0x15   : > { %p385_p2 = por %p384_p1, %p383_p0 }
  0x16   : > { %p381_p13 = pneg %p380_p12 }
  0x17   : > { %p387_p4 = por %p386_p3, %p385_p2 }
  0x19   : > { %p388_p5 = pnand %p387_p4, %p381_p13 }
  0x1b   : > { %391 = shalt.err (!%p388_p5)
}
  0x1c   : > { %s392_s6 = scalar_lea.vmem %s572_s26, 256  ;;  %s489_s14 = smov [#allocation3]  }
  0x1d   : > { %p393_p6 = scmp.ne.s32.totalorder %s572_s26, %s392_s6  ;;  %s397_s15 = sshll.u32 %s489_s14, 4  ;;  %s398_s15 = int_to_ptr.vmem [resolvable:$false] %s397_s15 }
  0x1e   : > { %s399_s16 = scalar_lea.vmem %s398_s15, 512  ;;  %p400_p12 = scmp.lt.s32.totalorder %s572_s26, %s398_s15 }
  0x1f   : > { %p395_p8 = pnand %p393_p6, %p379_p11  ;;  %p401_p0 = scmp.lt.s32.totalorder %s399_s16, %s392_s6 }
  0x21   : > { %p396_p10 = pneg %p395_p8  ;;  %p402_p1 = por %p401_p0, %p400_p12 }
  0x23   : > { %p403_p2 = pnand %p402_p1, %p396_p10 }
  0x25   : > { %406 = shalt.err (!%p403_p2)
}
  0x26   : > { %s490_s19 = smov 128   ;;  %s491_s20 = smov 8  }
  0x27   : > { %311 = dma.hbm_to_vmem [thread:$0]  (!%p568_p9), %s564_s24, 256, %s572_s26, %s574_s28, %s490_s19, %s490_s19, %s491_s20  }
  0x28   : > { %p289_p11 = scmp.ge.s32.totalorder %s487_s11, 1  ;;  %p120_p13 = scmp.lt.s32.totalorder %s487_s11, 3 }
  0x2a   : > { %p121_p3 = pnand %p289_p11, %p120_p13 }
  0x2b   : > { %s126_s21 = sand.u32 (!%p121_p3), 1, %s471_s7  }
  0x2c   : > { %124 = sbr.rel (%p121_p3) target bundleno = 425 (0x1a9), region = 24  ;;  %s290_s22 = sshll.u32 (!%p121_p3), %s126_s21, 4 }
  0x2d   : > { %s127_s23 = scalar_lea.sflag (!%p121_p3), [#allocation4], %s126_s21  ;;  %s130_s25 = scalar_lea.vmem (!%p121_p3), [#allocation3], %s290_s22 }
  0x33   : > { %458 = dma.done.wait (%p551_p7), %s127_s23, 256  }
  0x34   : > { %460 = vsyncadd (%p551_p7), %s127_s23, 4294967040  ;;  %p291_p4 = scmp.ne.s32.totalorder %s479_s9, 0 }
  0x35   : > { %vm150_vm0 = vcmask (!%p291_p4), 261120   ;;  %v492_v0 = vmov (!%p291_p4), 0.0  }
  0x36   : > { %149 = sbr.rel (%p291_p4) target bundleno = 61 (0x3d), region = 32  ;;  %151 = vst.msk [vmem:[#allocation2] sm:$0xff] (!%p291_p4), %vm150_vm0, %v492_v0  ;;  %152 = vst.msk [vmem:[#allocation2 + $0x8] sm:$0xff] (!%p291_p4), %vm150_vm0, %v492_v0 }
  0x3d PF: > { %v153_v1 = vld [vmem:[%s130_s25] sm:$0xff]  ;;  %vm157_vm1 = vcmask 261120   ;;  %v154_v2 = vld [vmem:[%s130_s25 + $0x8] sm:$0xff]  ;;  %p292_p7 = scmp.ne.s32.totalorder %s479_s9, 1 }
  0x3e   : > { %v155_v3 = vmul.f32 %v153_v1, %v153_v1  ;;  %v156_v4 = vmul.f32 %v154_v2, %v154_v2  ;;  %v168_v12 = vld [vmem:[#allocation2] sm:$0xff]  ;;  %v169_v16 = vld [vmem:[#allocation2 + $0x8] sm:$0xff]  ;;  %vm204_vm2 = vcmask (!%p292_p7), 257024  }
  0x40   : > { %v158_v5 = vsel %vm157_vm1, %v155_v3, 0.0  ;;  %v161_v6 = vsel %vm157_vm1, %v156_v4, 0.0 }
  0x41   : > { %159 = vadd.xlane.f32.xlu0 %v158_v5 }
  0x45   : > { %162 = vadd.xlane.f32.xlu0 %v161_v6 }
  0xce   : > { %v160_v7 = vpop.xlane.xlu0 %159 }
  0xcf   : > { %v164_v8 = vadd.f32 1e-12, %v160_v7 }
  0xd1   : > { %369 = vrsqrt.f32 %v164_v8 }
  0xd2   : > { %v163_v9 = vpop.xlane.xlu0 %162 }
  0xd3   : > { %v165_v10 = vadd.f32 1e-12, %v163_v9 }
  0xd5   : > { %371 = vrsqrt.f32 %v165_v10 }
  0xdb   : > { %v370_v11 = vpop.eup %369 }
  0xdc   : > { %v170_v13 = vmul.f32 %v370_v11, %v153_v1 }
  0xde   : > { %v172_v14 = vadd.f32 %v170_v13, %v168_v12  ;;  %179 = sbr.rel (%p292_p7) target bundleno = 399 (0x18f), region = 36 }
  0xdf   : > { %v372_v15 = vpop.eup %371 }
  0xe0   : > { %174 = vst.msk [vmem:[#allocation2] sm:$0xff] %vm157_vm1, %v172_v14  ;;  %v171_v17 = vmul.f32 %v372_v15, %v154_v2 }
  0xe2   : > { %v173_v18 = vadd.f32 %v171_v17, %v169_v16 }
  0xe4   : > { %175 = vst.msk [vmem:[#allocation2 + $0x8] sm:$0xff] %vm157_vm1, %v173_v18 }
  0xe7   : > { %v180_v19 = vld [vmem:[#allocation2] sm:$0xff] }
  0xe8   : > { %v182_v21 = vmul.f32 %v180_v19, %v180_v19 }
  0xea   : > { %v184_v23 = vsel %vm157_vm1, %v182_v21, 0.0 }
  0xeb   : > { %v181_v20 = vld [vmem:[#allocation2 + $0x8] sm:$0xff]  ;;  %185 = vadd.xlane.f32.xlu0 %v184_v23 }
  0xec   : > { %v183_v22 = vmul.f32 %v181_v20, %v181_v20 }
  0xee   : > { %v187_v24 = vsel %vm157_vm1, %v183_v22, 0.0 }
  0xef   : > { %188 = vadd.xlane.f32.xlu0 %v187_v24 }
 0x178   : > { %v186_v25 = vpop.xlane.xlu0 %185 }
 0x179   : > { %v190_v26 = vadd.f32 1e-12, %v186_v25 }
 0x17b   : > { %373 = vrsqrt.f32 %v190_v26 }
 0x17c   : > { %v189_v27 = vpop.xlane.xlu0 %188 }
 0x17d   : > { %v191_v28 = vadd.f32 1e-12, %v189_v27 }
 0x17f   : > { %375 = vrsqrt.f32 %v191_v28 }
 0x185   : > { %v374_v29 = vpop.eup %373 }
 0x186   : > { %v194_v30 = vmul.f32 %v374_v29, %v180_v19 }
 0x188   : > { %v300_v31 = vpack.c.bf16 %v194_v30, %v194_v30 }
 0x189   : > { %v376_v32 = vpop.eup %375 }
 0x18a   : > { %205 = vst.msk [vmem:[#allocation6] sm:$0xf] %vm204_vm2, %v300_v31  ;;  %v195_v33 = vmul.f32 %v376_v32, %v181_v20 }
 0x18c   : > { %v301_v34 = vpack.c.bf16 %v195_v33, %v195_v33 }
 0x18e   : > { %206 = vst.msk [vmem:[#allocation6 + $0x4] sm:$0xf] %vm204_vm2, %v301_v34 }
 0x18f PF: > { %p619_p9 = scmp.eq.s32.totalorder %s283_s12, 1  ;;  %s493_s17 = smov [#allocation6]  }
 0x190   : > { %s216_s24 = sshll.u32 %s493_s17, 4  ;;  %s217_s24 = int_to_ptr.vmem [resolvable:$true] %s216_s24 }
 0x191   : > { %s407_s26 = scalar_lea.vmem %s217_s24, 128  ;;  %p414_p10 = scmp.lt.s32.totalorder %s217_s24, %s217_s24 }
 0x192   : > { %p408_p5 = scmp.ne.s32.totalorder %s217_s24, %s407_s26  ;;  %p415_p12 = scmp.lt.s32.totalorder %s407_s26, %s407_s26 }
 0x194   : > { %p409_p6 = pnand %p408_p5, %p619_p9  ;;  %p416_p0 = por %p415_p12, %p414_p10 }
 0x196   : > { %p410_p8 = pneg %p409_p6 }
 0x198   : > { %p417_p1 = pnand %p416_p0, %p410_p8 }
 0x19a   : > { %420 = shalt.err (!%p417_p1)
}
 0x19b   : > { %s421_s12 = scalar_lea.hbm %s664_s1, 128 }
 0x19c   : > { %p422_p2 = scmp.ne.s32.totalorder %s664_s1, %s421_s12  ;;  %p427_p3 = scmp.lt.u32.totalorder %s421_s12, %s664_s1 }
 0x19e   : > { %p423_p11 = pnand %p422_p2, %p619_p9 }
 0x1a0   : > { %p424_p13 = pneg %p423_p11 }
 0x1a2   : > { %p429_p4 = pnand %p427_p3, %p424_p13 }
 0x1a4   : > { %432 = shalt.err (!%p429_p4)
}
 0x1a5   : > { %s494_s4 = smov 64   ;;  %s495_s5 = smov 4  }
 0x1a6   : > { %305 = dma.vmem_to_hbm [thread:$0]  (%p619_p9), %s217_s24, 128, %s664_s1, [#allocation5], %s494_s4, %s494_s4, %s495_s5  }
 0x1a7   : > { %462 = dma.done.wait (%p619_p9), [#allocation5], 128  }
 0x1a8   : > { %464 = vsyncadd (%p619_p9), [#allocation5], 4294967168 }
 0x1a9 PF: > { %s15_s11 = sadd.s32 1, %s487_s11   ;;  %s669_s6 = smov %s471_s7 }
 0x1aa   : > { %p12_p7 = scmp.ge.s32.totalorder %s15_s11, 4   ;;  %s670_s7 = smov %s475_s8 }
 0x1ab   : > { %s671_s8 = smov %s557_s18  ;;  %s672_s9 = smov %s483_s10 }
 0x1ac   : > { %s673_s10 = smov %s675_s13  ;;  %14 = sbr.rel (!%p12_p7) target bundleno = 5 (0x5), region = 70 }
 0x1b3   :  { %232 = vsyncpa [#allocation4], 1 }
 0x1b4   :  { %234 = vsyncpa [#allocation4 + $0x1], 1 }
 0x1b5   :  { %235 = vsyncpa [#allocation5], 1 }
 0x1b6   :  { %237 = vsyncpa [#allocation5 + $0x1], 1 }

</bundles_post_ra>
